<compile_context>
chip_gen: v6e
topology: v6e:2x2x1
jax: 0.10.0
libtpu: 0.0.40
codegen_flags: <defaults>
</compile_context>

<pallas_src>
import jax
import jax.numpy as jnp
from jax.experimental import pallas as pl
from jax.experimental.pallas import tpu as pltpu


def _uniform_noise_kernel(a_ref, x_ref, u_ref, o_ref):
    # a_ref: (1,) f32 scalar in SMEM; x_ref/u_ref/o_ref: (TR, L) VMEM tiles.
    a = a_ref[0]
    # (u - 0.5) * 2 * a  ==  u * (2*a) - a   (one mul + one sub per vreg)
    noise = u_ref[...] * (2.0 * a) - a
    o_ref[...] = x_ref[...] + noise.astype(x_ref.dtype)


def uniform_noise(x, a=0.1, key=None):
    """y = x + eps, eps ~ U(-a, a).  Elementwise add fused in a Pallas kernel."""
    if key is None:
        key = jax.random.PRNGKey(0)

    orig_shape = x.shape
    flat = x.reshape(-1)
    total = flat.size

    # Lane-dense slab: last dim is a multiple of 128 (512 lanes for big inputs).
    L = 512 if total >= 512 * 64 else 128
    rows_raw = pl.cdiv(total, L)

    # Row tile: multiple of 8 sublanes, capped at 512 rows (<= 1 MiB f32 tile).
    TR = min(512, ((rows_raw + 7) // 8) * 8)
    R = ((rows_raw + TR - 1) // TR) * TR          # rows padded to multiple of TR

    padded = R * L
    if padded != total:
        flat = jnp.pad(flat, (0, padded - total))
    x2 = flat.reshape(R, L)

    # Uniform randoms in [0, 1), generated once in the wrapper.
    u2 = jax.random.uniform(key, (R, L), dtype=jnp.float32)

    a_arr = jnp.asarray(a, dtype=jnp.float32).reshape(1)

    grid = (R // TR,)
    out2 = pl.pallas_call(
        _uniform_noise_kernel,
        out_shape=jax.ShapeDtypeStruct((R, L), x2.dtype),
        grid=grid,
        in_specs=[
            pl.BlockSpec(memory_space=pltpu.MemorySpace.SMEM),  # a (scalar)
            pl.BlockSpec((TR, L), lambda i: (i, 0)),            # x tile
            pl.BlockSpec((TR, L), lambda i: (i, 0)),            # u tile
        ],
        out_specs=pl.BlockSpec((TR, L), lambda i: (i, 0)),
        input_output_aliases={1: 0},                            # reuse x slab
        compiler_params=pltpu.CompilerParams(
            dimension_semantics=("parallel",),
        ),
    )(a_arr, x2, u2)

    return out2.reshape(-1)[:total].reshape(orig_shape)


if __name__ == "__main__":
    key = jax.random.PRNGKey(0)
    kx, kn = jax.random.split(key)

    # Small NCHW input consistent with the PyTorch module's usage.
    x = jax.random.uniform(kx, (2, 4, 16, 16), dtype=jnp.float32)

    a = 0.1  # default amplitude from UniformNoise.__init__
    y = uniform_noise(x, a=a, key=kn)
    y = jax.block_until_ready(y)

    # Sanity checks: noise bounded in [-a, a), shape/dtype preserved.
    eps = y - x
    assert y.shape == x.shape and y.dtype == x.dtype
    assert float(jnp.max(jnp.abs(eps))) <= a + 1e-6
    assert float(jnp.std(eps)) > 0.0  # noise actually added

    print("KERNEL_OK")
</pallas_src>

<mosaic_0001>
module attributes {stable_mosaic.version = 11 : i64} {
  func.func @_uniform_noise_kernel(%arg0: i32, %arg1: memref<1xf32, #tpu.memory_space<smem>>, %arg2: memref<16x128xf32, #tpu.memory_space<vmem>>, %arg3: memref<16x128xf32, #tpu.memory_space<vmem>>, %arg4: memref<16x128xf32, #tpu.memory_space<vmem>>) attributes {dimension_semantics = [#tpu.dimension_semantics<parallel>], iteration_bounds = array<i64: 1>, scalar_prefetch = 0 : i64, scratch_operands = 0 : i64, tpu.core_type = #tpu.core_type<tc>, window_params = [{transform_indices = @transform_0, window_bounds = array<i64: 1>}, {transform_indices = @transform_1, window_bounds = array<i64: 16, 128>}, {transform_indices = @transform_2, window_bounds = array<i64: 16, 128>}, {transform_indices = @transform_3, window_bounds = array<i64: 16, 128>}]} {
    %c0 = arith.constant 0 : index
    %0 = memref.load %arg1[%c0] : memref<1xf32, #tpu.memory_space<smem>>
    %c0_0 = arith.constant 0 : index
    %c0_1 = arith.constant 0 : index
    %1 = vector.load %arg3[%c0_0, %c0_1] : memref<16x128xf32, #tpu.memory_space<vmem>>, vector<16x128xf32>
    %cst = arith.constant 2.000000e+00 : f32
    %2 = arith.mulf %cst, %0 : f32
    %3 = vector.broadcast %2 : f32 to vector<16x128xf32>
    %4 = arith.mulf %1, %3 : vector<16x128xf32>
    %5 = vector.broadcast %0 : f32 to vector<16x128xf32>
    %6 = arith.subf %4, %5 : vector<16x128xf32>
    %c0_2 = arith.constant 0 : index
    %c0_3 = arith.constant 0 : index
    %7 = vector.load %arg2[%c0_2, %c0_3] : memref<16x128xf32, #tpu.memory_space<vmem>>, vector<16x128xf32>
    %8 = arith.addf %7, %6 : vector<16x128xf32>
    %c0_4 = arith.constant 0 : index
    %c0_5 = arith.constant 0 : index
    %9 = vector.load %arg4[%c0_4, %c0_5] : memref<16x128xf32, #tpu.memory_space<vmem>>, vector<16x128xf32>
    tpu.vector_store %arg4[%c0_4, %c0_5], %8 {strides = array<i32>} : memref<16x128xf32, #tpu.memory_space<vmem>>, vector<16x128xf32>,
    return
  }
  func.func @transform_0(%arg0: i32) -> i32 {
    %c0_i32 = arith.constant 0 : i32
    %c0_i32_0 = arith.constant 0 : i32
    return %c0_i32 : i32
  }
  func.func @transform_1(%arg0: i32) -> (i32, i32) {
    %c0_i32 = arith.constant 0 : i32
    %c0_i32_0 = arith.constant 0 : i32
    return %arg0, %c0_i32 : i32, i32
  }
  func.func @transform_2(%arg0: i32) -> (i32, i32) {
    %c0_i32 = arith.constant 0 : i32
    %c0_i32_0 = arith.constant 0 : i32
    return %arg0, %c0_i32 : i32, i32
  }
  func.func @transform_3(%arg0: i32) -> (i32, i32) {
    %c0_i32 = arith.constant 0 : i32
    %c0_i32_0 = arith.constant 0 : i32
    return %arg0, %c0_i32 : i32, i32
  }
}

</mosaic_0001>

<bundles_post_ra>
// kernel: tpu_custom_call.1
= control target key start
LH: loop header
LB: loop body
LE: loop exit
PB: predicated region body
PF: predicated region fallthrough
CT: control target
= control target key end

     0   :  { %9 = vsyncpa [#allocation4], 0  ;;  %s159_s0 = inlined_call_operand.<no memory space> [shape: f32[1], index: 0, kind: input, shape index: {}]   ;;  %s160_s1 = inlined_call_operand.hbm [shape: f32[16,128], index: 1, kind: input, shape index: {}, may-alias: {1,3}]   ;;  %s161_s2 = inlined_call_operand.vmem [shape: f32[16,128], index: 2, kind: input, shape index: {}]   ;;  %s162_s3 = inlined_call_operand.hbm [shape: f32[16,128], index: 3, kind: output, shape index: {}, may-alias: {1,3}]  }
   0x1   :  { %10 = vsyncpa [#allocation5], 0  ;;  %s111_s12 = smov [#allocation3]  }
   0x2   :  { %s18_s13 = sshll.u32 %s111_s12, 4  ;;  %s19_s13 = int_to_ptr.vmem [resolvable:$true] %s18_s13 }
   0x3   :  { %s75_s14 = scalar_lea.vmem %s19_s13, 256  ;;  %p80_p1 = scmp.lt.s32.totalorder %s19_s13, %s19_s13 }
   0x4   :  { %p76_p0 = scmp.ne.s32.totalorder %s19_s13, %s75_s14  ;;  %p81_p2 = scmp.lt.s32.totalorder %s75_s14, %s75_s14 }
   0x6   :  { %p82_p3 = por %p81_p2, %p80_p1 }
   0x8   :  { %p83_p4 = pnand %p82_p3, %p76_p0 }
   0xa   :  { %86 = shalt.err (!%p83_p4)
}
   0xb   :  { %s112_s15 = smov 128   ;;  %s113_s16 = smov 8  }
   0xc   :  { %24 = dma.hbm_to_vmem [thread:$0]  %s160_s1, 256, %s19_s13, [#allocation4], %s112_s15, %s112_s15, %s113_s16  }
   0xd   :  { %107 = dma.done.wait [#allocation4], 256  }
   0xe   :  { %108 = vsyncadd [#allocation4], 4294967040  ;;  %s33_s21 = smul.f32 2.0, %s159_s0  ;;  %v31_v1 = vld [vmem:[%s161_s2] sm:$0xff]  ;;  %v37_v2 = vstv %s159_s0  ;;  %v32_v3 = vld [vmem:[%s161_s2 + $0x8] sm:$0xff]  ;;  %s114_s1 = smov [#allocation6]  }
   0xf   :  { %v40_v6 = vld [vmem:[#allocation3] sm:$0xff]  ;;  %v41_v7 = vld [vmem:[#allocation3 + $0x8] sm:$0xff]  ;;  %s51_s28 = sshll.u32 %s114_s1, 4  ;;  %s52_s28 = int_to_ptr.vmem [resolvable:$true] %s51_s28 }
  0x10   :  { %v34_v0 = vstv %s33_s21  ;;  %s87_s29 = scalar_lea.vmem %s52_s28, 256  ;;  %p92_p6 = scmp.lt.s32.totalorder %s52_s28, %s52_s28 }
  0x11   :  { %v35_v4 = vmul.f32 %v34_v0, %v31_v1  ;;  %v36_v5 = vmul.f32 %v34_v0, %v32_v3  ;;  %p88_p5 = scmp.ne.s32.totalorder %s52_s28, %s87_s29  ;;  %p93_p7 = scmp.lt.s32.totalorder %s87_s29, %s87_s29 }
  0x13   :  { %v38_v8 = vsub.f32 %v35_v4, %v37_v2  ;;  %v39_v9 = vsub.f32 %v36_v5, %v37_v2  ;;  %p94_p8 = por %p93_p7, %p92_p6 }
  0x15   :  { %v42_v10 = vadd.f32 %v40_v6, %v38_v8  ;;  %v43_v11 = vadd.f32 %v41_v7, %v39_v9  ;;  %p95_p9 = pnand %p94_p8, %p88_p5 }
  0x17   :  { %44 = vst [vmem:[#allocation6] sm:$0xff] %v42_v10  ;;  %45 = vst [vmem:[#allocation6 + $0x8] sm:$0xff] %v43_v11 }
  0x18   :  { %98 = shalt.err (!%p95_p9)
}
  0x19   :  { %57 = dma.vmem_to_hbm [thread:$0]  %s52_s28, 256, %s162_s3, [#allocation5], %s112_s15, %s112_s15, %s113_s16  }
  0x1a   :  { %109 = dma.done.wait [#allocation5], 256  }
  0x1b   :  { %110 = vsyncadd [#allocation5], 4294967040 }
  0x1c   :  { %61 = vsyncpa [#allocation4], 1 }
  0x1d   :  { %62 = vsyncpa [#allocation5], 1 }

</bundles_post_ra>
